<compile_context>
chip_gen: v7x
topology: tpu7x:2x2x1
jax: 0.10.0
libtpu: 0.0.40
codegen_flags: <defaults>
</compile_context>

<pallas_src>
import functools

import jax
import jax.numpy as jnp
from jax.experimental import pallas as pl
from jax.experimental.pallas import tpu as pltpu


_EPS = 1e-4  # matches the eps passed to torch.clamp / F.normalize in the module


def _sop_loss_tile_kernel(output_ref, label_ref, u_ref, v_ref, trans_t_ref,
                          pred_out_ref, ce_out_ref, mse_out_ref,
                          *, Tr, num_classes, total_b, tile_b):
    C = num_classes
    TB = tile_b

    # Per-tile upcast (inputs may be bf16/f32; no wrapper-side astype copies).
    out = output_ref[...].astype(jnp.float32)     # (C, TB) logits^T
    lab = label_ref[...].astype(jnp.float32)      # (C, TB) labels^T (soft or hard)
    u_g = u_ref[...].astype(jnp.float32)          # (1, TB) u[index]^T
    v_g = v_ref[...].astype(jnp.float32)          # (C, TB) v[index]^T
    tr_t = trans_t_ref[...].astype(jnp.float32)   # (C, C)  trans^T (resident block)

    # Valid-batch mask for the (possibly partial) last tile.
    t = pl.program_id(0)
    lane = jax.lax.broadcasted_iota(jnp.int32, (1, TB), 1)
    valid = (t * TB + lane) < total_b             # (1, TB) bool

    # T^T = clip((trans^T)^2, 0, 1);  (T*Tr + (1-Tr)*I)^T built directly (I^T = I).
    T_t = jnp.clip(tr_t * tr_t, 0.0, 1.0)
    ri = jax.lax.broadcasted_iota(jnp.int32, (C, C), 0)
    ci = jax.lax.broadcasted_iota(jnp.int32, (C, C), 1)
    eye = (ri == ci).astype(jnp.float32)
    T_mix_t = T_t * Tr + (1.0 - Tr) * eye

    # U_square / V_square, clamped to [0, 1]; u broadcasts over the class sublanes.
    U_sq = jnp.clip(u_g * u_g * lab, 0.0, 1.0)
    V_sq = jnp.clip(v_g * v_g * (1.0 - lab), 0.0, 1.0)

    # Softmax over classes (sublane reduction); divide -> EUP reciprocal.
    m = jnp.max(out, axis=0, keepdims=True)                        # (1, TB)
    e = jnp.exp(out - m)
    sm = e * pl.reciprocal(jnp.sum(e, axis=0, keepdims=True), approx=True)

    # prediction = clamp(T_mix^T @ sm + U - V, min=eps); L1-normalize (eps=1e-4); clamp.
    pred = jnp.dot(T_mix_t, sm, preferred_element_type=jnp.float32) + U_sq - V_sq
    pred = jnp.maximum(pred, _EPS)
    norm = jnp.maximum(jnp.sum(pred, axis=0, keepdims=True), _EPS)
    pred = jnp.clip(pred * pl.reciprocal(norm, approx=True), _EPS, 1.0)

    # One-hot of argmax(output) over classes (first index on ties, like torch CPU).
    row = jax.lax.broadcasted_iota(jnp.int32, (C, TB), 0)
    first_idx = jnp.min(jnp.where(out == m, row, C), axis=0, keepdims=True)
    one_hot = (row == first_idx).astype(jnp.float32)               # (C, TB)

    # MSE term: T^T @ one_hot + U - V - label; squared-sum per batch column.
    mse_t = (jnp.dot(T_t, one_hot, preferred_element_type=jnp.float32)
             + U_sq - V_sq - lab)
    mse_col = jnp.sum(mse_t * mse_t, axis=0, keepdims=True)        # (1, TB)

    # Cross-entropy per batch column.
    ce_col = -jnp.sum(lab * jnp.log(pred), axis=0, keepdims=True)  # (1, TB)

    # Mask padded batch columns with where (NOT multiply: garbage columns may be NaN),
    # reduce over lanes, and emit per-tile partials (summed in JAX glue).
    ce_out_ref[0] = jnp.sum(jnp.where(valid, ce_col, 0.0), axis=1, keepdims=True)
    mse_out_ref[0] = jnp.sum(jnp.where(valid, mse_col, 0.0), axis=1, keepdims=True)
    pred_out_ref[0] = jnp.sum(jnp.where(valid, pred, 0.0), axis=1, keepdims=True)


def sop_trans_mat_loss(index, output, output2, label, d1_label,
                       u, v, trans, *, Tr=0.0, ratio_balance=0.0):
    """Forward pass of sop_trans_mat_loss. output2 / d1_label are unused (as in torch)."""
    del output2, d1_label
    B, C = output.shape

    # Lane-dense working layout: classes on sublanes, batch on lanes.
    out_t = jnp.transpose(output)           # (C, B)
    lab_t = jnp.transpose(label)            # (C, B)
    u_t = jnp.transpose(u[index])           # (1, B)  gathered u[index]
    v_t = jnp.transpose(v[index])           # (C, B)  gathered v[index]
    trans_t = jnp.transpose(trans)          # (C, C)

    # Batch tile: full B when small (block == full dim is always legal), else a
    # 128-multiple.  ~64 KiB/tile of streamed data -> fits any generation's VMEM
    # (incl. v7x's 64 MiB) with double-buffering and plenty of headroom.
    TB = B if B <= 512 else 512
    num_tiles = pl.cdiv(B, TB)

    kernel = functools.partial(
        _sop_loss_tile_kernel,
        Tr=float(Tr), num_classes=C, total_b=B, tile_b=TB)

    cost = pl.CostEstimate(
        flops=int(4 * B * C * C + 24 * B * C),
        transcendentals=int(2 * B * C + 2 * B),
        bytes_accessed=int(4 * (3 * B * C + B + C * C + num_tiles * (C + 2))))

    pred_part, ce_part, mse_part = pl.pallas_call(
        kernel,
        out_shape=(
            jax.ShapeDtypeStruct((num_tiles, C, 1), jnp.float32),  # per-class pred sums
            jax.ShapeDtypeStruct((num_tiles, 1, 1), jnp.float32),  # CE partial sums
            jax.ShapeDtypeStruct((num_tiles, 1, 1), jnp.float32),  # MSE partial sums
        ),
        grid=(num_tiles,),
        in_specs=[
            pl.BlockSpec((C, TB), lambda t: (0, t)),   # logits^T
            pl.BlockSpec((C, TB), lambda t: (0, t)),   # label^T
            pl.BlockSpec((1, TB), lambda t: (0, t)),   # u[index]^T
            pl.BlockSpec((C, TB), lambda t: (0, t)),   # v[index]^T
            pl.BlockSpec((C, C), lambda t: (0, 0)),    # trans^T (stays resident)
        ],
        out_specs=(
            pl.BlockSpec((1, C, 1), lambda t: (t, 0, 0)),
            pl.BlockSpec((1, 1, 1), lambda t: (t, 0, 0)),
            pl.BlockSpec((1, 1, 1), lambda t: (t, 0, 0)),
        ),
        compiler_params=pltpu.CompilerParams(
            dimension_semantics=("parallel",),          # v7x: shard tiles across 2 TCs
            vmem_limit_bytes=16 * 1024 * 1024),
        cost_estimate=cost,
    )(out_t, lab_t, u_t, v_t, trans_t)

    # Tiny scalar epilogue in JAX glue (lets the grid axis stay 'parallel').
    inv_b = 1.0 / B
    loss = (jnp.sum(ce_part) + jnp.sum(mse_part)) * inv_b

    if ratio_balance > 0.0:
        avg_pred = jnp.clip(jnp.sum(pred_part, axis=0)[:, 0] * inv_b, _EPS, 1.0)
        balance_kl = -jnp.sum(jnp.log(avg_pred)) * (1.0 / C)
        loss = loss + ratio_balance * balance_kl

    return loss


if __name__ == "__main__":
    key = jax.random.PRNGKey(0)
    k_u, k_v, k_idx, k_out, k_out2, k_lab = jax.random.split(key, 6)

    num_examp = 32
    num_classes = 10
    batch = 8

    # Parameters (deterministic init matching nn.init.normal_(mean=0, std=1e-8) and eye).
    u = 1e-8 * jax.random.normal(k_u, (num_examp, 1), dtype=jnp.float32)
    v = 1e-8 * jax.random.normal(k_v, (num_examp, num_classes), dtype=jnp.float32)
    trans = jnp.eye(num_classes, dtype=jnp.float32)

    # Inputs.
    index = jax.random.randint(k_idx, (batch,), 0, num_examp)
    output = jax.random.normal(k_out, (batch, num_classes), dtype=jnp.float32)
    output2 = jax.random.normal(k_out2, (batch, num_classes), dtype=jnp.float32)
    label_idx = jax.random.randint(k_lab, (batch,), 0, num_classes)
    label = jax.nn.one_hot(label_idx, num_classes, dtype=jnp.float32)
    d1_label = label_idx  # unused, passed for signature fidelity

    loss = sop_trans_mat_loss(index, output, output2, label, d1_label,
                              u, v, trans, Tr=0.0, ratio_balance=0.0)
    jax.block_until_ready(loss)
    print("KERNEL_OK")
</pallas_src>

<mosaic_0001>
module attributes {stable_mosaic.version = 11 : i64} {
  func.func @_sop_loss_tile_kernel(%arg0: i32, %arg1: memref<10x8xf32, #tpu.memory_space<vmem>>, %arg2: memref<10x8xf32, #tpu.memory_space<vmem>>, %arg3: memref<1x8xf32, #tpu.memory_space<vmem>>, %arg4: memref<10x8xf32, #tpu.memory_space<vmem>>, %arg5: memref<10x10xf32, #tpu.memory_space<vmem>>, %arg6: memref<1x10x1xf32, #tpu.memory_space<vmem>>, %arg7: memref<1x1x1xf32, #tpu.memory_space<vmem>>, %arg8: memref<1x1x1xf32, #tpu.memory_space<vmem>>) attributes {dimension_semantics = [#tpu.dimension_semantics<parallel>], iteration_bounds = array<i64: 1>, scalar_prefetch = 0 : i64, scratch_operands = 0 : i64, tpu.core_type = #tpu.core_type<tc>, window_params = [{transform_indices = @transform_0, window_bounds = array<i64: 10, 8>}, {transform_indices = @transform_1, window_bounds = array<i64: 10, 8>}, {transform_indices = @transform_2, window_bounds = array<i64: 1, 8>}, {transform_indices = @transform_3, window_bounds = array<i64: 10, 8>}, {pipeline_mode = #tpu.pipeline_mode<synchronous>, transform_indices = @transform_4, window_bounds = array<i64: 10, 10>}, {transform_indices = @transform_5, window_bounds = array<i64: 1, 10, 1>}, {transform_indices = @transform_6, window_bounds = array<i64: 1, 1, 1>}, {transform_indices = @transform_7, window_bounds = array<i64: 1, 1, 1>}]} {
    %c0 = arith.constant 0 : index
    %c0_0 = arith.constant 0 : index
    %0 = vector.load %arg1[%c0, %c0_0] : memref<10x8xf32, #tpu.memory_space<vmem>>, vector<10x8xf32>
    %c0_1 = arith.constant 0 : index
    %c0_2 = arith.constant 0 : index
    %1 = vector.load %arg2[%c0_1, %c0_2] : memref<10x8xf32, #tpu.memory_space<vmem>>, vector<10x8xf32>
    %c0_3 = arith.constant 0 : index
    %c0_4 = arith.constant 0 : index
    %2 = vector.load %arg3[%c0_3, %c0_4] : memref<1x8xf32, #tpu.memory_space<vmem>>, vector<1x8xf32>
    %c0_5 = arith.constant 0 : index
    %c0_6 = arith.constant 0 : index
    %3 = vector.load %arg4[%c0_5, %c0_6] : memref<10x8xf32, #tpu.memory_space<vmem>>, vector<10x8xf32>
    %c0_7 = arith.constant 0 : index
    %c0_8 = arith.constant 0 : index
    %4 = vector.load %arg5[%c0_7, %c0_8] : memref<10x10xf32, #tpu.memory_space<vmem>>, vector<10x10xf32>
    %5 = tpu.iota {dimensions = array<i32: 1>} : vector<1x8xi32>
    %c8_i32 = arith.constant 8 : i32
    %6 = arith.muli %arg0, %c8_i32 : i32
    %7 = vector.broadcast %6 : i32 to vector<1x8xi32>
    %8 = arith.addi %7, %5 : vector<1x8xi32>
    %c8_i32_9 = arith.constant 8 : i32
    %9 = vector.broadcast %c8_i32_9 : i32 to vector<1x8xi32>
    %10 = arith.cmpi slt, %8, %9 : vector<1x8xi32>
    %11 = arith.mulf %4, %4 : vector<10x10xf32>
    %cst = arith.constant 0.000000e+00 : f32
    %cst_10 = arith.constant 1.000000e+00 : f32
    %12 = vector.broadcast %cst : f32 to vector<10x10xf32>
    %13 = arith.maximumf %12, %11 : vector<10x10xf32>
    %14 = vector.broadcast %cst_10 : f32 to vector<10x10xf32>
    %15 = arith.minimumf %14, %13 : vector<10x10xf32>
    %16 = tpu.iota {dimensions = array<i32: 0>} : vector<10x10xi32>
    %17 = tpu.iota {dimensions = array<i32: 1>} : vector<10x10xi32>
    %18 = arith.cmpi eq, %16, %17 : vector<10x10xi32>
    %19 = arith.extui %18 : vector<10x10xi1> to vector<10x10xi32>
    %20 = arith.sitofp %19 : vector<10x10xi32> to vector<10x10xf32>
    %cst_11 = arith.constant 0.000000e+00 : f32
    %21 = vector.broadcast %cst_11 : f32 to vector<10x10xf32>
    %22 = arith.mulf %15, %21 : vector<10x10xf32>
    %cst_12 = arith.constant 1.000000e+00 : f32
    %23 = vector.broadcast %cst_12 : f32 to vector<10x10xf32>
    %24 = arith.mulf %23, %20 : vector<10x10xf32>
    %25 = arith.addf %22, %24 : vector<10x10xf32>
    %26 = arith.mulf %2, %2 : vector<1x8xf32>
    %27 = vector.broadcast %26 : vector<1x8xf32> to vector<10x8xf32>
    %28 = arith.mulf %27, %1 : vector<10x8xf32>
    %cst_13 = arith.constant 0.000000e+00 : f32
    %cst_14 = arith.constant 1.000000e+00 : f32
    %29 = vector.broadcast %cst_13 : f32 to vector<10x8xf32>
    %30 = arith.maximumf %29, %28 : vector<10x8xf32>
    %31 = vector.broadcast %cst_14 : f32 to vector<10x8xf32>
    %32 = arith.minimumf %31, %30 : vector<10x8xf32>
    %33 = arith.mulf %3, %3 : vector<10x8xf32>
    %cst_15 = arith.constant 1.000000e+00 : f32
    %34 = vector.broadcast %cst_15 : f32 to vector<10x8xf32>
    %35 = arith.subf %34, %1 : vector<10x8xf32>
    %36 = arith.mulf %33, %35 : vector<10x8xf32>
    %cst_16 = arith.constant 0.000000e+00 : f32
    %cst_17 = arith.constant 1.000000e+00 : f32
    %37 = vector.broadcast %cst_16 : f32 to vector<10x8xf32>
    %38 = arith.maximumf %37, %36 : vector<10x8xf32>
    %39 = vector.broadcast %cst_17 : f32 to vector<10x8xf32>
    %40 = arith.minimumf %39, %38 : vector<10x8xf32>
    %cst_18 = arith.constant dense<0xFF800000> : vector<8xf32>
    %41 = vector.multi_reduction <maximumf>, %0, %cst_18 [0] : vector<10x8xf32> to vector<8xf32>
    %42 = vector.shape_cast %41 : vector<8xf32> to vector<1x8xf32>
    %43 = vector.broadcast %42 : vector<1x8xf32> to vector<10x8xf32>
    %44 = arith.subf %0, %43 : vector<10x8xf32>
    %45 = math.exp %44 : vector<10x8xf32>
    %cst_19 = arith.constant dense<0.000000e+00> : vector<8xf32>
    %46 = vector.multi_reduction <add>, %45, %cst_19 [0] : vector<10x8xf32> to vector<8xf32>
    %47 = vector.shape_cast %46 : vector<8xf32> to vector<1x8xf32>
    %48 = tpu.reciprocal %47 {approx = true} : vector<1x8xf32> -> vector<1x8xf32>
    %49 = vector.broadcast %48 : vector<1x8xf32> to vector<10x8xf32>
    %50 = arith.mulf %45, %49 : vector<10x8xf32>
    %cst_20 = arith.constant dense<0.000000e+00> : vector<10x8xf32>
    %51 = tpu.matmul %25, %50, %cst_20 {dimension_numbers = #tpu.dot_dimension_numbers<[1], [0], [0], [1], [0, 0, 1, 1], [], []>} : vector<10x10xf32>, vector<10x8xf32>, vector<10x8xf32> -> vector<10x8xf32>
    %52 = arith.addf %51, %32 : vector<10x8xf32>
    %53 = arith.subf %52, %40 : vector<10x8xf32>
    %cst_21 = arith.constant 9.99999974E-5 : f32
    %54 = vector.broadcast %cst_21 : f32 to vector<10x8xf32>
    %55 = arith.maximumf %53, %54 : vector<10x8xf32>
    %cst_22 = arith.constant dense<0.000000e+00> : vector<8xf32>
    %56 = vector.multi_reduction <add>, %55, %cst_22 [0] : vector<10x8xf32> to vector<8xf32>
    %57 = vector.shape_cast %56 : vector<8xf32> to vector<1x8xf32>
    %cst_23 = arith.constant 9.99999974E-5 : f32
    %58 = vector.broadcast %cst_23 : f32 to vector<1x8xf32>
    %59 = arith.maximumf %57, %58 : vector<1x8xf32>
    %60 = tpu.reciprocal %59 {approx = true} : vector<1x8xf32> -> vector<1x8xf32>
    %61 = vector.broadcast %60 : vector<1x8xf32> to vector<10x8xf32>
    %62 = arith.mulf %55, %61 : vector<10x8xf32>
    %cst_24 = arith.constant 9.99999974E-5 : f32
    %cst_25 = arith.constant 1.000000e+00 : f32
    %63 = vector.broadcast %cst_24 : f32 to vector<10x8xf32>
    %64 = arith.maximumf %63, %62 : vector<10x8xf32>
    %65 = vector.broadcast %cst_25 : f32 to vector<10x8xf32>
    %66 = arith.minimumf %65, %64 : vector<10x8xf32>
    %67 = tpu.iota {dimensions = array<i32: 0>} : vector<10x8xi32>
    %68 = vector.broadcast %42 : vector<1x8xf32> to vector<10x8xf32>
    %69 = arith.cmpf oeq, %0, %68 : vector<10x8xf32>
    %c10_i32 = arith.constant 10 : i32
    %70 = vector.broadcast %c10_i32 : i32 to vector<10x8xi32>
    %71 = arith.select %69, %67, %70 : vector<10x8xi1>, vector<10x8xi32>
    %cst_26 = arith.constant dense<2147483647> : vector<8xi32>
    %72 = vector.multi_reduction <minsi>, %71, %cst_26 [0] : vector<10x8xi32> to vector<8xi32>
    %73 = vector.shape_cast %72 : vector<8xi32> to vector<1x8xi32>
    %74 = vector.broadcast %73 : vector<1x8xi32> to vector<10x8xi32>
    %75 = arith.cmpi eq, %67, %74 : vector<10x8xi32>
    %76 = arith.extui %75 : vector<10x8xi1> to vector<10x8xi32>
    %77 = arith.sitofp %76 : vector<10x8xi32> to vector<10x8xf32>
    %cst_27 = arith.constant dense<0.000000e+00> : vector<10x8xf32>
    %78 = tpu.matmul %15, %77, %cst_27 {dimension_numbers = #tpu.dot_dimension_numbers<[1], [0], [0], [1], [0, 0, 1, 1], [], []>} : vector<10x10xf32>, vector<10x8xf32>, vector<10x8xf32> -> vector<10x8xf32>
    %79 = arith.addf %78, %32 : vector<10x8xf32>
    %80 = arith.subf %79, %40 : vector<10x8xf32>
    %81 = arith.subf %80, %1 : vector<10x8xf32>
    %82 = arith.mulf %81, %81 : vector<10x8xf32>
    %cst_28 = arith.constant dense<0.000000e+00> : vector<8xf32>
    %83 = vector.multi_reduction <add>, %82, %cst_28 [0] : vector<10x8xf32> to vector<8xf32>
    %84 = vector.shape_cast %83 : vector<8xf32> to vector<1x8xf32>
    %85 = math.log %66 : vector<10x8xf32>
    %86 = arith.mulf %1, %85 : vector<10x8xf32>
    %cst_29 = arith.constant dense<0.000000e+00> : vector<8xf32>
    %87 = vector.multi_reduction <add>, %86, %cst_29 [0] : vector<10x8xf32> to vector<8xf32>
    %88 = vector.shape_cast %87 : vector<8xf32> to vector<1x8xf32>
    %cst_30 = arith.constant 0.000000e+00 : f32
    %89 = vector.broadcast %cst_30 : f32 to vector<1x8xf32>
    %90 = arith.subf %89, %88 : vector<1x8xf32>
    %cst_31 = arith.constant 0.000000e+00 : f32
    %91 = vector.broadcast %cst_31 : f32 to vector<1x8xf32>
    %92 = arith.select %10, %90, %91 : vector<1x8xi1>, vector<1x8xf32>
    %cst_32 = arith.constant dense<0.000000e+00> : vector<1xf32>
    %93 = vector.multi_reduction <add>, %92, %cst_32 [1] : vector<1x8xf32> to vector<1xf32>
    %94 = vector.shape_cast %93 : vector<1xf32> to vector<1x1xf32>
    %c0_33 = arith.constant 0 : index
    %c0_34 = arith.constant 0 : index
    %c0_35 = arith.constant 0 : index
    %95 = vector.load %arg7[%c0_33, %c0_34, %c0_35] : memref<1x1x1xf32, #tpu.memory_space<vmem>>, vector<1x1x1xf32>
    %96 = vector.shape_cast %95 : vector<1x1x1xf32> to vector<1x1xf32>
    %97 = vector.shape_cast %94 : vector<1x1xf32> to vector<1x1x1xf32>
    tpu.vector_store %arg7[%c0_33, %c0_34, %c0_35], %97 {strides = array<i32>} : memref<1x1x1xf32, #tpu.memory_space<vmem>>, vector<1x1x1xf32>,
    %cst_36 = arith.constant 0.000000e+00 : f32
    %98 = vector.broadcast %cst_36 : f32 to vector<1x8xf32>
    %99 = arith.select %10, %84, %98 : vector<1x8xi1>, vector<1x8xf32>
    %cst_37 = arith.constant dense<0.000000e+00> : vector<1xf32>
    %100 = vector.multi_reduction <add>, %99, %cst_37 [1] : vector<1x8xf32> to vector<1xf32>
    %101 = vector.shape_cast %100 : vector<1xf32> to vector<1x1xf32>
    %c0_38 = arith.constant 0 : index
    %c0_39 = arith.constant 0 : index
    %c0_40 = arith.constant 0 : index
    %102 = vector.load %arg8[%c0_38, %c0_39, %c0_40] : memref<1x1x1xf32, #tpu.memory_space<vmem>>, vector<1x1x1xf32>
    %103 = vector.shape_cast %102 : vector<1x1x1xf32> to vector<1x1xf32>
    %104 = vector.shape_cast %101 : vector<1x1xf32> to vector<1x1x1xf32>
    tpu.vector_store %arg8[%c0_38, %c0_39, %c0_40], %104 {strides = array<i32>} : memref<1x1x1xf32, #tpu.memory_space<vmem>>, vector<1x1x1xf32>,
    %cst_41 = arith.constant 0.000000e+00 : f32
    %105 = vector.shape_cast %10 : vector<1x8xi1> to vector<1x8xi1>
    %106 = vector.broadcast %105 : vector<1x8xi1> to vector<10x8xi1>
    %107 = vector.broadcast %cst_41 : f32 to vector<10x8xf32>
    %108 = arith.select %106, %66, %107 : vector<10x8xi1>, vector<10x8xf32>
    %cst_42 = arith.constant dense<0.000000e+00> : vector<10xf32>
    %109 = vector.multi_reduction <add>, %108, %cst_42 [1] : vector<10x8xf32> to vector<10xf32>
    %110 = vector.shape_cast %109 : vector<10xf32> to vector<10x1xf32>
    %c0_43 = arith.constant 0 : index
    %c0_44 = arith.constant 0 : index
    %c0_45 = arith.constant 0 : index
    %111 = vector.load %arg6[%c0_43, %c0_44, %c0_45] : memref<1x10x1xf32, #tpu.memory_space<vmem>>, vector<1x10x1xf32>
    %112 = vector.shape_cast %111 : vector<1x10x1xf32> to vector<10x1xf32>
    %113 = vector.shape_cast %110 : vector<10x1xf32> to vector<1x10x1xf32>
    tpu.vector_store %arg6[%c0_43, %c0_44, %c0_45], %113 {strides = array<i32>} : memref<1x10x1xf32, #tpu.memory_space<vmem>>, vector<1x10x1xf32>,
    return
  }
  func.func @transform_0(%arg0: i32) -> (i32, i32) {
    %c0_i32 = arith.constant 0 : i32
    %c0_i32_0 = arith.constant 0 : i32
    return %c0_i32, %arg0 : i32, i32
  }
  func.func @transform_1(%arg0: i32) -> (i32, i32) {
    %c0_i32 = arith.constant 0 : i32
    %c0_i32_0 = arith.constant 0 : i32
    return %c0_i32, %arg0 : i32, i32
  }
  func.func @transform_2(%arg0: i32) -> (i32, i32) {
    %c0_i32 = arith.constant 0 : i32
    %c0_i32_0 = arith.constant 0 : i32
    return %c0_i32, %arg0 : i32, i32
  }
  func.func @transform_3(%arg0: i32) -> (i32, i32) {
    %c0_i32 = arith.constant 0 : i32
    %c0_i32_0 = arith.constant 0 : i32
    return %c0_i32, %arg0 : i32, i32
  }
  func.func @transform_4(%arg0: i32) -> (i32, i32) {
    %c0_i32 = arith.constant 0 : i32
    %c0_i32_0 = arith.constant 0 : i32
    %c0_i32_1 = arith.constant 0 : i32
    return %c0_i32, %c0_i32_0 : i32, i32
  }
  func.func @transform_5(%arg0: i32) -> (i32, i32, i32) {
    %c0_i32 = arith.constant 0 : i32
    %c0_i32_0 = arith.constant 0 : i32
    %c0_i32_1 = arith.constant 0 : i32
    return %arg0, %c0_i32, %c0_i32_0 : i32, i32, i32
  }
  func.func @transform_6(%arg0: i32) -> (i32, i32, i32) {
    %c0_i32 = arith.constant 0 : i32
    %c0_i32_0 = arith.constant 0 : i32
    %c0_i32_1 = arith.constant 0 : i32
    return %arg0, %c0_i32, %c0_i32_0 : i32, i32, i32
  }
  func.func @transform_7(%arg0: i32) -> (i32, i32, i32) {
    %c0_i32 = arith.constant 0 : i32
    %c0_i32_0 = arith.constant 0 : i32
    %c0_i32_1 = arith.constant 0 : i32
    return %arg0, %c0_i32, %c0_i32_0 : i32, i32, i32
  }
}

</mosaic_0001>

<bundles_post_ra>
// kernel: tpu_custom_call.1
= control target key start
LH: loop header
LB: loop body
LE: loop exit
PB: predicated region body
PF: predicated region fallthrough
CT: control target
= control target key end

     0   :  { %13 = vsyncpa [#allocation3], 0  ;;  %vm82_vm0 = vcmask 64512   ;;  %vm84_vm1 = vcmask 58368   ;;  %v34_v2 = vlaneseq  ;;  %s684_s0 = inlined_call_operand.vmem [shape: f32[10,8], index: 0, kind: input, shape index: {}]   ;;  %s685_s1 = inlined_call_operand.vmem [shape: f32[10,8], index: 1, kind: input, shape index: {}]   ;;  %s686_s2 = inlined_call_operand.vmem [shape: f32[1,8], index: 2, kind: input, shape index: {}]   ;;  %s687_s3 = inlined_call_operand.vmem [shape: f32[10,8], index: 3, kind: input, shape index: {}]   ;;  %s688_s4 = inlined_call_operand.vmem [shape: f32[10,10], index: 4, kind: input, shape index: {}]   ;;  %s689_s5 = inlined_call_operand.vmem [shape: f32[1,10,1], index: 5, kind: output, shape index: {0}]   ;;  %s690_s6 = inlined_call_operand.hbm [shape: f32[1,1,1], index: 6, kind: output, shape index: {1}]   ;;  %s691_s7 = inlined_call_operand.hbm [shape: f32[1,1,1], index: 7, kind: output, shape index: {2}]  }
   0x1   :  { %v25_v0 = vld [vmem:[%s684_s0] sm:$0xff]  ;;  %v26_v1 = vld [vmem:[%s684_s0 + $0x8] sm:$0x3] }
   0x2   :  { %v83_v3 = vsel %vm82_vm0, %v25_v0, -inf  ;;  %v85_v4 = vsel %vm84_vm1, %v26_v1, -inf  ;;  %v32_v5 = vld [vmem:[%s688_s4] sm:$0xff]  ;;  %v579_v7 = vand.u32 127, %v34_v2  ;;  %v581_v9 = vshrl.u32 %v34_v2, 7 }
   0x3   :  { %v86_v6 = vmax.f32 %v83_v3, %v85_v4  ;;  %v40_v8 = vmul.f32 %v32_v5, %v32_v5 }
   0x4   :  { %vm49_vm2 = vcmp.eq.s32.totalorder %v581_v9, %v579_v7 }
   0x5   :  { %v87_v10 = vrot.slane %v86_v6, 4  ;;  %v42_v11 = vmax.f32 %v40_v8, 0.0 }
   0x6   :  { %14 = vsyncpa [#allocation5], 0  ;;  %v523_v14 = vmov 0.0   ;;  %vm111_vm3 = vcmask 80896   ;;  %v48_v22 = vadd.s32 8, %v581_v9  ;;  %vm118_vm10 = vcmask 1041408  }
   0x7   :  { %v88_v12 = vmax.f32 %v86_v6, %v87_v10  ;;  %v44_v13 = vmin.f32 %v42_v11, 1.0  ;;  %v413_v15 = vsel %vm49_vm2, 1.0, %v523_v14  ;;  %v33_v35 = vld [vmem:[%s688_s4 + $0x8] sm:$0x3]  ;;  %v524_v48 = vmov 1.0   ;;  %v620_v5 = vld [vmem:[%s685_s1] sm:$0xff] }
   0x8   :  { %v41_v42 = vmul.f32 %v33_v35, %v33_v35  ;;  %vm50_vm14 = vcmp.eq.s32.totalorder %v48_v22, %v579_v7  ;;  %vm525_vm15 = vmmov 1   ;;  %v29_v63 = vld [vmem:[%s686_s2] sm:$0x1]  ;;  %v612_v2 = vld [vmem:[%s685_s1 + $0x8] sm:$0x3]  ;;  %v74_v11 = vsub.f32 1.0, %v620_v5 }
   0x9   :  { %v89_v16 = vrot.slane %v88_v12, 2  ;;  %v55_v17 = vmul.f32 0.0, %v44_v13  ;;  %443 = vmatprep.mubr.msk.f32.mxu1 %vm111_vm3, %v44_v13  ;;  %vm447_vm2 = vmpackc.low %vm118_vm10, %vm525_vm15  ;;  %v414_v60 = vsel %vm50_vm14, 1.0, %v523_v14  ;;  %v31_v3 = vld [vmem:[%s687_s3 + $0x8] sm:$0x3]  ;;  %v30_v6 = vld [vmem:[%s687_s3] sm:$0xff] }
   0xa   :  { %v43_v47 = vmax.f32 %v41_v42, 0.0  ;;  %v73_v8 = vmul.f32 %v31_v3, %v31_v3  ;;  %v72_v10 = vmul.f32 %v30_v6, %v30_v6  ;;  %s526_s18 = smov [#allocation2]   ;;  %s527_s20 = smov [#allocation4]  }
   0xb   :  { %v90_v18 = vmax.f32 %v88_v12, %v89_v16  ;;  %v57_v19 = vadd.f32 %v413_v15, %v55_v17  ;;  %s389_s19 = sshll.u32 %s526_s18, 4  ;;  %s399_s21 = sshll.u32 %s527_s20, 4  ;;  %s390_s19 = int_to_ptr.vmem [resolvable:$true] %s389_s19  ;;  %s400_s21 = int_to_ptr.vmem [resolvable:$true] %s399_s21 }
   0xc   :  { %v45_v52 = vmin.f32 %v43_v47, 1.0  ;;  %v76_v15 = vmul.f32 %v74_v11, %v72_v10  ;;  %s475_s22 = scalar_lea.vmem %s390_s19, 16  ;;  %s479_s23 = scalar_lea.vmem %s390_s19, 32 }
   0xd   :  { %v91_v20 = vrot.slane %v90_v18, 1  ;;  %436 = vmatprep.mubr.msk.f32.mxu0 %vm111_vm3, %v57_v19  ;;  %p476_p0 = scmp.ne.s32.totalorder %s390_s19, %s475_s22  ;;  %p480_p1 = scmp.lt.s32.totalorder %s390_s19, %s390_s19 }
   0xe   :  { %v56_v59 = vmul.f32 0.0, %v45_v52  ;;  %v78_v19 = vmax.f32 %v76_v15, 0.0  ;;  %p481_p2 = scmp.lt.s32.totalorder %s479_s23, %s475_s22 }
   0xf   :  { %v92_v21 = vmax.f32 %v90_v18, %v91_v20 }
  0x10   :  { %v58_v62 = vadd.f32 %v414_v60, %v56_v59  ;;  %p482_p3 = por %p481_p2, %p480_p1 }
  0x11   :  { %v93_v23 = vsub.f32 %v25_v0, %v92_v21  ;;  %v94_v24 = vsub.f32 %v26_v1, %v92_v21  ;;  %vm218_vm4 = vcmp.eq.f32.partialorder %v25_v0, %v92_v21  ;;  %vm219_vm5 = vcmp.eq.f32.partialorder %v26_v1, %v92_v21 }
  0x12   :  { %v220_v25 = vsel %vm218_vm4, %v581_v9, 10  ;;  %v221_v26 = vsel %vm219_vm5, %v48_v22, 10  ;;  %v59_v0 = vmul.f32 %v29_v63, %v29_v63  ;;  %v63_v1 = vsub.s32 0, %v581_v9  ;;  %p483_p4 = pnand %p482_p3, %p476_p0 }
  0x13   :  { %v95_v27 = vmul.f32 1.442695, %v93_v23  ;;  %v97_v28 = vmul.f32 1.442695, %v94_v24  ;;  %v222_v29 = vsel %vm82_vm0, %v220_v25, 2147483647 }
  0x14   :  { %v223_v30 = vsel %vm84_vm1, %v221_v26, 2147483647  ;;  %v64_v4 = vrot.slane %v59_v0, %v63_v1  ;;  %v80_v26 = vmin.f32 %v78_v19, 1.0  ;;  %vm379_vm4 = vcmask 1024  }
  0x15   :  { %463 = vpow2.f32 %v95_v27  ;;  %vm224_vm6 = vcmp.lt.s32.totalorder %v222_v29, %v223_v30  ;;  %vm360_vm5 = vcmask 0  }
  0x16   :  { %465 = vpow2.f32 %v97_v28  ;;  %v225_v31 = vsel %vm224_vm6, %v222_v29, %v223_v30  ;;  %v67_v12 = vmul.f32 %v64_v4, %v612_v2  ;;  %v66_v13 = vmul.f32 %v64_v4, %v620_v5 }
  0x17   :  { %v226_v32 = vrot.slane %v225_v31, 4 }
  0x18   :  { %v69_v16 = vmax.f32 %v67_v12, 0.0  ;;  %v68_v17 = vmax.f32 %v66_v13, 0.0 }
  0x19   :  { %vm227_vm7 = vcmp.lt.s32.totalorder %v225_v31, %v226_v32 }
  0x1a   :  { %v228_v33 = vsel %vm227_vm7, %v225_v31, %v226_v32  ;;  %v71_v20 = vmin.f32 %v69_v16, 1.0  ;;  %v70_v21 = vmin.f32 %v68_v17, 1.0 }
  0x1b   :  { %v229_v34 = vrot.slane %v228_v33, 2 }
  0x1d   :  { %vm230_vm8 = vcmp.lt.s32.totalorder %v228_v33, %v229_v34 }
  0x1e   :  { %v231_v36 = vsel %vm230_vm8, %v228_v33, %v229_v34 }
  0x1f   :  { %v464_v37 = vpop.eup %463  ;;  %v232_v38 = vrot.slane %v231_v36, 1 }
  0x20   :  { %v466_v39 = vpop.eup %465  ;;  %v99_v40 = vsel %vm82_vm0, %v464_v37, 0.0 }
  0x21   :  { %v100_v41 = vsel %vm84_vm1, %v466_v39, 0.0  ;;  %vm233_vm9 = vcmp.lt.s32.totalorder %v231_v36, %v232_v38 }
  0x22   :  { %v101_v43 = vadd.f32 %v100_v41, %v99_v40  ;;  %v234_v44 = vsel %vm233_vm9, %v231_v36, %v232_v38 }
  0x23   :  { %vm235_vm11 = vcmp.eq.s32.totalorder %v581_v9, %v234_v44  ;;  %vm236_vm12 = vcmp.eq.s32.totalorder %v48_v22, %v234_v44  ;;  %v75_v9 = vsub.f32 1.0, %v612_v2 }
  0x24   :  { %v102_v45 = vrot.slane %v101_v43, 4  ;;  %v419_v46 = vsel %vm236_vm12, 1.0, %v523_v14  ;;  %vm453_vm13 = vmpackc.low %vm118_vm10, %vm235_vm11 }
  0x25   :  { %v452_v49 = vpack.c.bf16 %v419_v46, %v524_v48  ;;  %v77_v14 = vmul.f32 %v75_v9, %v73_v8 }
  0x26   :  { %v103_v50 = vadd.f32 %v102_v45, %v101_v43 }
  0x27   :  { %454 = vmatprep.subr.msk.bf16.mxu1 %vm453_vm13, %v452_v49  ;;  %v79_v18 = vmax.f32 %v77_v14, 0.0 }
  0x28   :  { %v104_v51 = vrot.slane %v103_v50, 2  ;;  %457 = vmatpush3.bf16.msk.msra.mxu1 %vm453_vm13, %v452_v49 }
  0x29   :  { %v81_v23 = vmin.f32 %v79_v18, 1.0 }
  0x2a   :  { %v105_v53 = vadd.f32 %v104_v51, %v103_v50 }
  0x2b   :  { %444 = vmatmul.mubr.msk.f32.vlgmr.msra.gmra.mrb[0].mxu1 %vm111_vm3, %v45_v52 }
  0x2c   :  { %v106_v54 = vrot.slane %v105_v53, 1 }
  0x2e   :  { %v107_v55 = vadd.f32 %v106_v54, %v105_v53 }
  0x30   :  { %467 = vrcp.f32 %v107_v55 }
  0x3a   :  { %v468_v56 = vpop.eup %467 }
  0x3b   :  { %v109_v57 = vmul.f32 %v468_v56, %v464_v37  ;;  %v110_v58 = vmul.f32 %v468_v56, %v466_v39 }
  0x3d   :  { %v446_v61 = vpack.c.bf16 %v110_v58, %v109_v57 }
  0x3f   :  { %448 = vmatprep.subr.msk.bf16.mxu0 %vm447_vm2, %v446_v61 }
  0x40   :  { %451 = vmatpush3.bf16.msk.msra.mxu0 %vm447_vm2, %v446_v61 }
  0x43   :  { %437 = vmatmul.mubr.msk.f32.vlgmr.msra.gmra.mrb[0].mxu0 %vm111_vm3, %v58_v62  ;;  %vm39_vm3 = vcmp.lt.s32.totalorder %v579_v7, 8 }
  0xfe   :  { %v445_v22 = vpop.f32.mrb[0].mxu1 }
  0xff   :  { %v322_v24 = vadd.f32 %v445_v22, %v71_v20  ;;  %v316_v25 = vpop.f32.mrb[1].mxu1 }
 0x100   :  { %v317_v27 = vadd.f32 %v316_v25, %v70_v21 }
 0x101   :  { %v326_v28 = vsub.f32 %v322_v24, %v81_v23 }
 0x102   :  { %v325_v29 = vsub.f32 %v317_v27, %v80_v26 }
 0x103   :  { %v328_v30 = vsub.f32 %v326_v28, %v612_v2 }
 0x104   :  { %v327_v31 = vsub.f32 %v325_v29, %v620_v5 }
 0x105   :  { %v330_v32 = vmul.f32 %v328_v30, %v328_v30 }
 0x106   :  { %v329_v33 = vmul.f32 %v327_v31, %v327_v31 }
 0x107   :  { %v332_v34 = vsel %vm84_vm1, %v330_v32, 0.0 }
 0x108   :  { %v331_v35 = vsel %vm82_vm0, %v329_v33, 0.0 }
 0x109   :  { %v333_v36 = vadd.f32 %v332_v34, %v331_v35 }
 0x10b   :  { %v334_v8 = vrot.slane %v333_v36, 4 }
 0x10d   :  { %v335_v13 = vadd.f32 %v334_v8, %v333_v36 }
 0x10f   :  { %v336_v17 = vrot.slane %v335_v13, 2 }
 0x116   :  { %v438_v37 = vpop.f32.mrb[0].mxu0 }
 0x117   :  { %v194_v38 = vadd.f32 %v438_v37, %v71_v20  ;;  %v188_v39 = vpop.f32.mrb[1].mxu0  ;;  %v337_v20 = vadd.f32 %v336_v17, %v335_v13 }
 0x118   :  { %v189_v40 = vadd.f32 %v188_v39, %v70_v21 }
 0x119   :  { %v198_v41 = vsub.f32 %v194_v38, %v81_v23  ;;  %v338_v23 = vrot.slane %v337_v20, 1 }
 0x11a   :  { %v197_v42 = vsub.f32 %v189_v40, %v80_v26 }
 0x11b   :  { %v200_v43 = vmax.f32 %v198_v41, 0.0001  ;;  %v339_v26 = vadd.f32 %v338_v23, %v337_v20 }
 0x11c   :  { %v199_v44 = vmax.f32 %v197_v42, 0.0001 }
 0x11d   :  { %v202_v45 = vsel %vm84_vm1, %v200_v43, 0.0  ;;  %v362_v27 = vsel %vm39_vm3, %v339_v26, 0.0 }
 0x11e   :  { %v201_v46 = vsel %vm82_vm0, %v199_v44, 0.0  ;;  %v363_v28 = vsel %vm82_vm0, %v362_v27, 0.0 }
 0x11f   :  { %v203_v47 = vadd.f32 %v202_v45, %v201_v46 }
 0x121   :  { %v204_v48 = vrot.slane %v203_v47, 4 }
 0x123   :  { %v205_v49 = vadd.f32 %v204_v48, %v203_v47 }
 0x125   :  { %v206_v50 = vrot.slane %v205_v49, 2 }
 0x127   :  { %v207_v51 = vadd.f32 %v206_v50, %v205_v49 }
 0x129   :  { %v208_v52 = vrot.slane %v207_v51, 1 }
 0x12b   :  { %v209_v53 = vadd.f32 %v208_v52, %v207_v51 }
 0x12d   :  { %v210_v54 = vmax.f32 %v209_v53, 0.0001 }
 0x12f   :  { %469 = vrcp.f32 %v210_v54 }
 0x139   :  { %v470_v55 = vpop.eup %469 }
 0x13a   :  { %v212_v56 = vmul.f32 %v470_v55, %v199_v44  ;;  %v213_v57 = vmul.f32 %v470_v55, %v200_v43 }
 0x13c   :  { %v214_v58 = vmax.f32 %v212_v56, 0.0001  ;;  %v215_v59 = vmax.f32 %v213_v57, 0.0001 }
 0x13e   :  { %v216_v60 = vmin.f32 %v214_v58, 1.0  ;;  %v217_v61 = vmin.f32 %v215_v59, 1.0 }
 0x140   :  { %v369_v62 = vsel %vm39_vm3, %v216_v60, 0.0  ;;  %471 = vlog2.f32 %v216_v60  ;;  %v370_v0 = vsel %vm39_vm3, %v217_v61, 0.0 }
 0x141   :  { %v371_v63 = vsel %vm82_vm0, %v369_v62, 0.0  ;;  %473 = vlog2.f32 %v217_v61  ;;  %v374_v1 = vsel %vm84_vm1, %v370_v0, 0.0 }
 0x142   :  { %372 = vadd.xlane.f32.xlu1 %v371_v63 }
 0x146   :  { %375 = vadd.xlane.f32.xlu1 %v374_v1 }
 0x14a   :  { %v472_v3 = vpop.eup %471 }
 0x14b   :  { %v474_v4 = vpop.eup %473  ;;  %v341_v6 = vmul.f32 0.6931472, %v472_v3 }
 0x14c   :  { %v343_v9 = vmul.f32 0.6931472, %v474_v4 }
 0x14d   :  { %v344_v10 = vmul.f32 %v341_v6, %v620_v5 }
 0x14e   :  { %v345_v11 = vmul.f32 %v343_v9, %v612_v2 }
 0x14f   :  { %v346_v12 = vsel %vm82_vm0, %v344_v10, 0.0 }
 0x150   :  { %v347_v14 = vsel %vm84_vm1, %v345_v11, 0.0  ;;  %vm377_vm1 = vcmask 7168  }
 0x151   :  { %v348_v15 = vadd.f32 %v347_v14, %v346_v12 }
 0x153   :  { %v349_v16 = vrot.slane %v348_v15, 4 }
 0x155   :  { %v350_v18 = vadd.f32 %v349_v16, %v348_v15 }
 0x157   :  { %v351_v19 = vrot.slane %v350_v18, 2 }
 0x159   :  { %v352_v21 = vadd.f32 %v351_v19, %v350_v18 }
 0x15b   :  { %v353_v22 = vrot.slane %v352_v21, 1 }
 0x15d   :  { %v354_v24 = vadd.f32 %v353_v22, %v352_v21 }
 0x15f   :  { %v355_v25 = vsub.f32 0.0, %v354_v24 }
 0x161   :  { %v356_v2 = vsel %vm39_vm3, %v355_v25, 0.0 }
 0x162   :  { %v357_v5 = vsel %vm82_vm0, %v356_v2, 0.0 }
 0x163   :  { %358 = vadd.xlane.f32.xlu0 %v357_v5 }
 0x167   :  { %364 = vadd.xlane.f32.xlu0 %v363_v28 }
 0x1cf   :  { %v373_v29 = vpop.xlane.xlu1 %372 }
 0x1d0   :  { %378 = vst.msk [vmem:[%s689_s5] sm:$0xff] %vm377_vm1, %v373_v29 }
 0x1d3   :  { %v376_v30 = vpop.xlane.xlu1 %375 }
 0x1d4   :  { %380 = vst.msk [vmem:[%s689_s5 + $0x8] sm:$0x3] %vm379_vm4, %v376_v30 }
 0x1f0   :  { %v359_v7 = vpop.xlane.xlu0 %358 }
 0x1f1   :  { %361 = vst.msk [vmem:[#allocation2] sm:$0x1] %vm360_vm5, %v359_v7 }
 0x1f2   :  { %486 = shalt.err (!%p483_p4)
}
 0x1f3   :  { %s487_s5 = scalar_lea.hbm %s690_s6, 16 }
 0x1f4   :  { %p488_p5 = scmp.ne.s32.totalorder %s690_s6, %s487_s5  ;;  %p491_p6 = scmp.lt.u32.totalorder %s487_s5, %s690_s6 }
 0x1f6   :  { %p493_p7 = pnand %p491_p6, %p488_p5 }
 0x1f8   :  { %496 = shalt.err (!%p493_p7)
}
 0x1f9   :  { %392 = dma.vmem_to_hbm [thread:$0]  %s390_s19, 16, %s690_s6, [#allocation3]   ;;  %v365_v31 = vpop.xlane.xlu0 %364 }
 0x1fa   :  { %366 = vst.msk [vmem:[#allocation4] sm:$0x1] %vm360_vm5, %v365_v31  ;;  %s497_s4 = scalar_lea.vmem %s400_s21, 16  ;;  %s501_s8 = scalar_lea.vmem %s400_s21, 32 }
 0x1fb   :  { %p498_p8 = scmp.ne.s32.totalorder %s400_s21, %s497_s4  ;;  %p502_p9 = scmp.lt.s32.totalorder %s400_s21, %s400_s21 }
 0x1fc   :  { %p503_p10 = scmp.lt.s32.totalorder %s501_s8, %s497_s4 }
 0x1fe   :  { %p504_p11 = por %p503_p10, %p502_p9 }
 0x200   :  { %p505_p12 = pnand %p504_p11, %p498_p8 }
 0x202   :  { %508 = shalt.err (!%p505_p12)
}
 0x203   :  { %s509_s11 = scalar_lea.hbm %s691_s7, 16 }
 0x204   :  { %p510_p13 = scmp.ne.s32.totalorder %s691_s7, %s509_s11  ;;  %p513_p0 = scmp.lt.u32.totalorder %s509_s11, %s691_s7 }
 0x206   :  { %p515_p1 = pnand %p513_p0, %p510_p13 }
 0x208   :  { %518 = shalt.err (!%p515_p1)
}
 0x209   :  { %402 = dma.vmem_to_hbm [thread:$0]  %s400_s21, 16, %s691_s7, [#allocation5]  }
 0x20a   :  { %519 = dma.done.wait [#allocation3], 16  }
 0x20b   :  { %520 = vsyncadd [#allocation3], 4294967280 }
 0x20c   :  { %521 = dma.done.wait [#allocation5], 16  }
 0x20d   :  { %522 = vsyncadd [#allocation5], 4294967280 }
 0x20e   :  { %411 = vsyncpa [#allocation3], 1 }
 0x20f   :  { %412 = vsyncpa [#allocation5], 1 }

</bundles_post_ra>
